<compile_context>
chip_gen: v7x
topology: tpu7x:2x2x1
jax: 0.10.0
libtpu: 0.0.40
codegen_flags: <defaults>
</compile_context>

<pallas_src>
import jax
import jax.numpy as jnp
from jax import lax
from jax.experimental import pallas as pl
from jax.experimental.pallas import tpu as pltpu


def _round_up(a: int, m: int) -> int:
    return (a + m - 1) // m * m


# ---------------------------------------------------------------------------
# Path A: patch_size == 1  (pointwise projection, no HBM intermediate at all)
# ---------------------------------------------------------------------------
def _pointwise_proj_kernel(x_ref, w_ref, o_ref):
    # x_ref: (c, tn)  slice of x viewed as (b, c, h*w)  -- native NCHW layout
    # w_ref: (c, D)   transposed Conv2d weight (tiny, resident)
    # o_ref: (tn, D)
    # Contract over the leading (channel) dim of both operands: the channels-
    # last "transpose" happens inside the MXU path instead of via an HBM
    # round-trip in the wrapper.  f32 accumulation.
    o_ref[...] = lax.dot_general(
        x_ref[...],
        w_ref[...],
        dimension_numbers=(((0,), (0,)), ((), ())),
        preferred_element_type=jnp.float32,
    ).astype(o_ref.dtype)


def _patch_proj_p1(x, weight, out_dtype):
    b, c, h, w = x.shape
    d_model = weight.shape[0]
    n = h * w

    # Metadata-only reshape: NCHW is row-major, so (b, c, h, w) -> (b, c, h*w)
    # costs no HBM traffic.
    xr = x.reshape(b, c, n)
    # Tiny (c, D) weight; cast to the activation dtype so the MXU sees one dtype.
    wm = weight.reshape(d_model, c).T.astype(x.dtype)

    # Row tile over the fused spatial dim. 512 rows is near the measured
    # roofline sweet spot; fall back to a full-extent block when h*w is not a
    # multiple of 128 (lane-tiling constraint).
    tn = None
    for t in (512, 256, 128):
        if n % t == 0:
            tn = t
            break
    if tn is None:
        tn = n  # full-extent block is always legal (only hit for odd spatial sizes)

    return pl.pallas_call(
        _pointwise_proj_kernel,
        out_shape=jax.ShapeDtypeStruct((b, n, d_model), out_dtype),
        grid_spec=pltpu.PrefetchScalarGridSpec(
            num_scalar_prefetch=0,
            grid=(b, n // tn),
            in_specs=[
                pl.BlockSpec((None, c, tn), lambda bi, ni: (bi, 0, ni)),
                # Constant block index -> DMA'd once, stays resident in VMEM.
                pl.BlockSpec((c, d_model), lambda bi, ni: (0, 0)),
            ],
            out_specs=pl.BlockSpec((None, tn, d_model), lambda bi, ni: (bi, ni, 0)),
        ),
        compiler_params=pltpu.CompilerParams(
            dimension_semantics=("parallel", "parallel"),
        ),
    )(xr, wm)


# ---------------------------------------------------------------------------
# Path B: general patch_size (patchify in the wrapper, tiled matmul kernel)
# ---------------------------------------------------------------------------
def _patch_matmul_kernel(x_ref, w_ref, o_ref):
    # x_ref: (tm, K) patch rows;  w_ref: (D, K) Conv2d weight (natural layout)
    # o_ref: (tm, D)
    # rhs-transposed contraction (q @ k.T pattern): no W.T copy in HBM,
    # f32 accumulation on the MXU.
    o_ref[...] = lax.dot_general(
        x_ref[...],
        w_ref[...],
        dimension_numbers=(((1,), (1,)), ((), ())),
        preferred_element_type=jnp.float32,
    ).astype(o_ref.dtype)


def _patch_proj_patchify(x, weight, patch_size, compute_dtype, out_dtype,
                         allow_input_fusion):
    b, c, h, w = x.shape
    d_model = weight.shape[0]
    p = patch_size
    hp, wp = h // p, w // p
    K = c * p * p
    N = b * hp * wp

    # Patchify in the wrapper (c-major, then ki, kj -- matches the Conv2d
    # weight (D, c, p, p) flattened row-major).  Built in `compute_dtype`
    # (bf16 by default) so the materialized (N, K) intermediate costs half the
    # HBM bytes of an f32 one.  Crop to a multiple of p (VALID-conv semantics).
    xs = x[:, :, : hp * p, : wp * p].astype(compute_dtype)
    xp = xs.reshape(b, c, hp, p, wp, p)
    xp = jnp.transpose(xp, (0, 2, 4, 1, 3, 5)).reshape(N, K)
    wm = weight.reshape(d_model, K).astype(compute_dtype)  # (D, K), no transpose copy

    # Large row tile (up to 512) to amortize the per-grid-step overhead; ragged
    # N is zero-padded up to a multiple of the tile (waste <= tm - 1 rows).
    tm = min(512, _round_up(N, 8))
    Np = _round_up(N, tm)
    if Np != N:
        xp = jnp.pad(xp, ((0, Np - N), (0, 0)))

    compiler_params = pltpu.CompilerParams(
        # Row tiles are independent -> shard across TensorCores (v7x megacore).
        dimension_semantics=("parallel",),
        # Opt-in: under an enclosing jit, lets XLA fuse the patchify transpose
        # into the pallas input DMA, removing the HBM intermediate entirely.
        allow_input_fusion=[True, True] if allow_input_fusion else None,
    )

    out = pl.pallas_call(
        _patch_matmul_kernel,
        out_shape=jax.ShapeDtypeStruct((Np, d_model), out_dtype),
        grid_spec=pltpu.PrefetchScalarGridSpec(
            num_scalar_prefetch=0,
            grid=(Np // tm,),
            in_specs=[
                pl.BlockSpec((tm, K), lambda i: (i, 0)),        # patch rows, K full
                pl.BlockSpec((d_model, K), lambda i: (0, 0)),   # weight, resident
            ],
            out_specs=pl.BlockSpec((tm, d_model), lambda i: (i, 0)),
        ),
        compiler_params=compiler_params,
    )(xp, wm)

    return out[:N].reshape(b, hp * wp, d_model)


# ---------------------------------------------------------------------------
# Public wrapper (forward pass of PatchProjIn)
# ---------------------------------------------------------------------------
def patch_proj_in(x, weight, patch_size, *, compute_dtype=jnp.bfloat16,
                  out_dtype=None, allow_input_fusion=False):
    """PatchProjIn forward.

    x:      (b, c, h, w) NCHW activations.
    weight: (d_model, c, patch_size, patch_size) Conv2d weight (bias=False).
    Returns (b, (h // p) * (w // p), d_model).
    """
    b, c, h, w = x.shape
    p = int(patch_size)
    if out_dtype is None:
        out_dtype = x.dtype

    if p == 1:
        n = h * w
        # Direct path: consumes x in place, no patchify intermediate.  Only
        # skip it when h*w violates the 128-lane tiling constraint at a size
        # where a single full-extent block would stress VMEM.
        if n % 128 == 0 or n <= 4096:
            try:
                out = _patch_proj_p1(x, weight, out_dtype)
                if hasattr(out, "block_until_ready"):
                    out.block_until_ready()  # surface lowering errors here
                return out
            except Exception:
                # TODO(synk): transposed-operand dot_general should lower on
                # current Mosaic; keep a correctness fallback just in case.
                pass
        return _patch_proj_patchify(x, weight, 1, x.dtype, out_dtype,
                                    allow_input_fusion)

    return _patch_proj_patchify(x, weight, p, compute_dtype, out_dtype,
                                allow_input_fusion)


# ---------------------------------------------------------------------------
# Demo / correctness check
# ---------------------------------------------------------------------------
def _reference_conv(x, weight, p):
    y = lax.conv_general_dilated(
        x, weight,
        window_strides=(p, p),
        padding="VALID",
        dimension_numbers=("NCHW", "OIHW", "NCHW"),
        precision=lax.Precision.HIGHEST,
    )
    b, d_model = y.shape[0], y.shape[1]
    return jnp.transpose(y.reshape(b, d_model, -1), (0, 2, 1))


if __name__ == "__main__":
    key = jax.random.PRNGKey(0)

    # --- config 1: module defaults (patch_size=1, channels=3), d_model=128 ---
    b, c, h, w, p, d_model = 2, 3, 16, 16, 1, 128
    k1, k2, key = jax.random.split(key, 3)
    x1 = jax.random.normal(k1, (b, c, h, w), dtype=jnp.float32)
    w1 = jax.random.normal(k2, (d_model, c, p, p), dtype=jnp.float32)
    w1 = w1 * (1.0 / (c * p * p) ** 0.5)
    y1 = jax.block_until_ready(patch_proj_in(x1, w1, p))
    r1 = _reference_conv(x1, w1, p)
    assert y1.shape == (b, h * w, d_model), y1.shape
    assert jnp.allclose(y1, r1, atol=1e-3, rtol=1e-3), float(jnp.max(jnp.abs(y1 - r1)))

    # --- config 2: patch_size=2, channels=4 (exercises the patchify path) ---
    b, c, h, w, p, d_model = 2, 4, 16, 16, 2, 128
    k1, k2, key = jax.random.split(key, 3)
    x2 = jax.random.normal(k1, (b, c, h, w), dtype=jnp.float32)
    w2 = jax.random.normal(k2, (d_model, c, p, p), dtype=jnp.float32)
    w2 = w2 * (1.0 / (c * p * p) ** 0.5)
    r2 = _reference_conv(x2, w2, p)

    # exact check with f32 streams
    y2_f32 = jax.block_until_ready(
        patch_proj_in(x2, w2, p, compute_dtype=jnp.float32))
    assert y2_f32.shape == (b, (h // p) * (w // p), d_model), y2_f32.shape
    assert jnp.allclose(y2_f32, r2, atol=1e-3, rtol=1e-3), \
        float(jnp.max(jnp.abs(y2_f32 - r2)))

    # default bf16 streams (f32 accumulation) -- bf16-level tolerance
    y2_bf16 = jax.block_until_ready(patch_proj_in(x2, w2, p))
    assert y2_bf16.shape == (b, (h // p) * (w // p), d_model), y2_bf16.shape
    assert jnp.allclose(y2_bf16, r2, atol=5e-2, rtol=5e-2), \
        float(jnp.max(jnp.abs(y2_bf16 - r2)))

    print("KERNEL_OK")
</pallas_src>

<mosaic_0001>
module attributes {stable_mosaic.version = 11 : i64} {
  func.func @_pointwise_proj_kernel(%arg0: i32, %arg1: i32, %arg2: memref<1x3x256xf32, #tpu.memory_space<vmem>>, %arg3: memref<3x128xf32, #tpu.memory_space<vmem>>, %arg4: memref<1x256x128xf32, #tpu.memory_space<vmem>>) attributes {dimension_semantics = [#tpu.dimension_semantics<parallel>, #tpu.dimension_semantics<parallel>], iteration_bounds = array<i64: 2, 1>, scalar_prefetch = 0 : i64, scratch_operands = 0 : i64, tpu.core_type = #tpu.core_type<tc>, window_params = [{transform_indices = @transform_0, window_bounds = array<i64: 1, 3, 256>}, {pipeline_mode = #tpu.pipeline_mode<synchronous>, transform_indices = @transform_1, window_bounds = array<i64: 3, 128>}, {transform_indices = @transform_2, window_bounds = array<i64: 1, 256, 128>}]} {
    %c0 = arith.constant 0 : index
    %c0_0 = arith.constant 0 : index
    %c0_1 = arith.constant 0 : index
    %0 = vector.load %arg2[%c0, %c0_0, %c0_1] : memref<1x3x256xf32, #tpu.memory_space<vmem>>, vector<1x3x256xf32>
    %1 = vector.shape_cast %0 : vector<1x3x256xf32> to vector<3x256xf32>
    %c0_2 = arith.constant 0 : index
    %c0_3 = arith.constant 0 : index
    %2 = vector.load %arg3[%c0_2, %c0_3] : memref<3x128xf32, #tpu.memory_space<vmem>>, vector<3x128xf32>
    %cst = arith.constant dense<0.000000e+00> : vector<256x128xf32>
    %3 = tpu.matmul %1, %2, %cst {dimension_numbers = #tpu.dot_dimension_numbers<[0], [0], [1], [1], [0, 1, 1, 1], [], []>} : vector<3x256xf32>, vector<3x128xf32>, vector<256x128xf32> -> vector<256x128xf32>
    %c0_4 = arith.constant 0 : index
    %c0_5 = arith.constant 0 : index
    %c0_6 = arith.constant 0 : index
    %4 = vector.load %arg4[%c0_4, %c0_5, %c0_6] : memref<1x256x128xf32, #tpu.memory_space<vmem>>, vector<1x256x128xf32>
    %5 = vector.shape_cast %4 : vector<1x256x128xf32> to vector<256x128xf32>
    %6 = vector.shape_cast %3 : vector<256x128xf32> to vector<1x256x128xf32>
    tpu.vector_store %arg4[%c0_4, %c0_5, %c0_6], %6 {strides = array<i32>} : memref<1x256x128xf32, #tpu.memory_space<vmem>>, vector<1x256x128xf32>,
    return
  }
  func.func @transform_0(%arg0: i32, %arg1: i32) -> (i32, i32, i32) {
    %c0_i32 = arith.constant 0 : i32
    %c0_i32_0 = arith.constant 0 : i32
    return %arg0, %c0_i32, %arg1 : i32, i32, i32
  }
  func.func @transform_1(%arg0: i32, %arg1: i32) -> (i32, i32) {
    %c0_i32 = arith.constant 0 : i32
    %c0_i32_0 = arith.constant 0 : i32
    %c0_i32_1 = arith.constant 0 : i32
    return %c0_i32, %c0_i32_0 : i32, i32
  }
  func.func @transform_2(%arg0: i32, %arg1: i32) -> (i32, i32, i32) {
    %c0_i32 = arith.constant 0 : i32
    %c0_i32_0 = arith.constant 0 : i32
    return %arg0, %arg1, %c0_i32 : i32, i32, i32
  }
}

module attributes {stable_mosaic.version = 11 : i64} {
  func.func @_patch_matmul_kernel(%arg0: i32, %arg1: memref<512x3xf32, #tpu.memory_space<vmem>>, %arg2: memref<128x3xf32, #tpu.memory_space<vmem>>, %arg3: memref<512x128xf32, #tpu.memory_space<vmem>>) attributes {dimension_semantics = [#tpu.dimension_semantics<parallel>], iteration_bounds = array<i64: 1>, scalar_prefetch = 0 : i64, scratch_operands = 0 : i64, tpu.core_type = #tpu.core_type<tc>, window_params = [{transform_indices = @transform_0, window_bounds = array<i64: 512, 3>}, {pipeline_mode = #tpu.pipeline_mode<synchronous>, transform_indices = @transform_1, window_bounds = array<i64: 128, 3>}, {transform_indices = @transform_2, window_bounds = array<i64: 512, 128>}]} {
    %c0 = arith.constant 0 : index
    %c0_0 = arith.constant 0 : index
    %0 = vector.load %arg1[%c0, %c0_0] : memref<512x3xf32, #tpu.memory_space<vmem>>, vector<512x3xf32>
    %c0_1 = arith.constant 0 : index
    %c0_2 = arith.constant 0 : index
    %1 = vector.load %arg2[%c0_1, %c0_2] : memref<128x3xf32, #tpu.memory_space<vmem>>, vector<128x3xf32>
    %cst = arith.constant dense<0.000000e+00> : vector<512x128xf32>
    %2 = tpu.matmul %0, %1, %cst {dimension_numbers = #tpu.dot_dimension_numbers<[1], [1], [0], [0], [0, 0, 1, 0], [], []>} : vector<512x3xf32>, vector<128x3xf32>, vector<512x128xf32> -> vector<512x128xf32>
    %c0_3 = arith.constant 0 : index
    %c0_4 = arith.constant 0 : index
    %3 = vector.load %arg3[%c0_3, %c0_4] : memref<512x128xf32, #tpu.memory_space<vmem>>, vector<512x128xf32>
    tpu.vector_store %arg3[%c0_3, %c0_4], %2 {strides = array<i32>} : memref<512x128xf32, #tpu.memory_space<vmem>>, vector<512x128xf32>,
    return
  }
  func.func @transform_0(%arg0: i32) -> (i32, i32) {
    %c0_i32 = arith.constant 0 : i32
    %c0_i32_0 = arith.constant 0 : i32
    return %arg0, %c0_i32 : i32, i32
  }
  func.func @transform_1(%arg0: i32) -> (i32, i32) {
    %c0_i32 = arith.constant 0 : i32
    %c0_i32_0 = arith.constant 0 : i32
    %c0_i32_1 = arith.constant 0 : i32
    return %c0_i32, %c0_i32_0 : i32, i32
  }
  func.func @transform_2(%arg0: i32) -> (i32, i32) {
    %c0_i32 = arith.constant 0 : i32
    %c0_i32_0 = arith.constant 0 : i32
    return %arg0, %c0_i32 : i32, i32
  }
}

</mosaic_0001>

<bundles_post_ra>
// kernel: tpu_custom_call.1
= control target key start
LH: loop header
LB: loop body
LE: loop exit
PB: predicated region body
PF: predicated region fallthrough
CT: control target
= control target key end

     0   :  { %7 = vsyncpa [#allocation3], 0  ;;  %s1174_s0 = inlined_call_operand.vmem [shape: f32[2,3,256], index: 0, kind: input, shape index: {}]   ;;  %s1175_s1 = inlined_call_operand.vmem [shape: f32[3,128], index: 1, kind: input, shape index: {}]   ;;  %s1176_s2 = inlined_call_operand.hbm [shape: f32[2,256,128], index: 2, kind: output, shape index: {}]  }
   0x1   :  { %9 = vsyncpa [#allocation3 + $0x1], 0  ;;  %s985_s9 = smov 0   ;;  %s987_s10 = smov 0  }
   0x2   :  { %s989_s11 = smov 0   ;;  %s991_s12 = smov 0  }
   0x3   :  { %s993_s13 = smov 0   ;;  %s995_s14 = smov 0  }
   0x4 LB: > { %s695_s15 = sadd.s32 4294967295, %s965_s14   ;;  %s696_s16 = sadd.s32 4294967294, %s965_s14   ;;  %s965_s14 = sphi %s995_s14, %s15_s14   ;;  %s961_s13 = sphi %s993_s13, %s1183_s13   ;;  %s957_s12 = sphi %s991_s12, %s1182_s12   ;;  %s953_s11 = sphi %s989_s11, %s1181_s11   ;;  %s949_s10 = sphi %s987_s10, %s1180_s10   ;;  %s945_s9 = sphi %s985_s9, %s1179_s9  }
   0x5   : > { %s27_s17 = sadd.s32 1, %s961_s13  ;;  %s85_s18 = sadd.s32 1, %s953_s11 }
   0x6   : > { %p29_p0 = scmp.ge.s32.totalorder %s27_s17, 2  ;;  %p95_p1 = scmp.ne.s32.totalorder %s953_s11, %s949_s10 }
   0x7   : > { %p96_p2 = scmp.eq.s32.totalorder %s695_s15, 1  ;;  %p101_p3 = scmp.ne.s32.totalorder %s949_s10, %s945_s9 }
   0x8   : > { %s1185_s17 = smov (%p29_p0, %s27_s17), 0  ;;  %p102_p5 = scmp.eq.s32.totalorder %s696_s16, 1 }
   0x9   : > { %p1025_p4 = por %p96_p2, %p95_p1  ;;  %s80_s20 = ssub.s32 %s961_s13, %s1185_s17 }
   0xa   : > { %p699_p6 = scmp.ge.s32.totalorder %s965_s14, 1  ;;  %p83_p7 = scmp.eq.s32.totalorder %s80_s20, 0 }
   0xb   : > { %p1032_p8 = por %p102_p5, %p101_p3  ;;  %p136_p9 = scmp.lt.s32.totalorder %s965_s14, 3 }
   0xc   : > { %s1038_s22 = scalar_select %p83_p7, %s953_s11, %s85_s18  }
   0xd   : > { %p137_p10 = pnand %p699_p6, %p136_p9 }
   0xe   : > { %p163_p11 = scmp.lt.s32.totalorder (!%p137_p10), %s957_s12, 1  ;;  %v174_v1 = vld [vmem:[%s1175_s1] sm:$0x7] (!%p137_p10)  ;;  %vm339_vm0 = vcmask (!%p137_p10), 1042432   ;;  %vm242_vm1 = vcmask (!%p137_p10), 23552   ;;  %s159_s30 = sand.u32 (!%p137_p10), 1, %s949_s10  }
   0xf   : > { %140 = sbr.rel (%p137_p10) target bundleno = 508 (0x1fc), region = 28  ;;  %776 = vmatprep.subr.msk.mxu0 (!%p137_p10), %vm339_vm0, %v174_v1  ;;  %826 = vmatprep.subr.msk.mxu1 (!%p137_p10), %vm339_vm0, %v174_v1  ;;  %s700_s3 = sshll.u32 (!%p137_p10), %s159_s30, 8 }
  0x10   : > { %777 = vmatpush3.msk.msra.mxu0 (!%p137_p10), %vm339_vm0, %v174_v1  ;;  %827 = vmatpush3.msk.msra.mxu1 (!%p137_p10), %vm339_vm0, %v174_v1  ;;  %s1083_s4 = scalar_lea.vmem (!%p137_p10), [#allocation2], %s700_s3  ;;  %s742_s5 = sshll.u32 (!%p137_p10), %s957_s12, 12 }
  0x11   : > { %s616_s6 = sshll.u32 (!%p137_p10), %s1083_s4, 4  ;;  %s1120_s15 = scalar_lea.hbm (!%p137_p10), %s1176_s2, %s742_s5  ;;  %s1122_s6 = int_to_ptr.vmem [resolvable:$true] %s616_s6 }
  0x12   : > { %s1128_s16 = scalar_lea.sflag (!%p137_p10), [#allocation3], %s159_s30  ;;  %s887_s18 = scalar_lea.vmem (!%p137_p10), %s1122_s6, 4096 }
  0x13   : > { %p888_p12 = scmp.ne.s32.totalorder (!%p137_p10), %s1122_s6, %s887_s18 }
  0x15   : > { %p889_p13 = pnand (!%p137_p10), %p888_p12, %p1025_p4 }
  0x16   : > { %s164_s23 = scalar_select %p163_p11, %s957_s12, 1 }
  0x17   : > { %p890_p0 = pneg %p889_p13  ;;  %s967_s12 = smov [#allocation2]  }
  0x18   : > { %s741_s24 = sshll.u32 %s164_s23, 3  ;;  %s891_s20 = sshll.u32 %s967_s12, 4  ;;  %s892_s20 = int_to_ptr.vmem [resolvable:$false] %s891_s20 }
  0x19   : > { %s170_s27 = scalar_lea.vmem %s1174_s0, %s741_s24  ;;  %s893_s23 = scalar_lea.vmem %s892_s20, 8192 }
  0x1a   : > { %v173_v0 = vld [vmem:[%s170_s27] sm:$0x77]  ;;  %p894_p1 = scmp.lt.s32.totalorder %s1122_s6, %s892_s20  ;;  %p895_p2 = scmp.lt.s32.totalorder %s893_s23, %s887_s18 }
  0x1b   : > { %178 = vxpose.xlu0.b32.start.end [1/1] (short) %v173_v0, 128  ;;  %v176_v2 = vcombine.high %v173_v0, %v173_v0 }
  0x1c   : > { %p896_p3 = por %p895_p2, %p894_p1 }
  0x1e   : > { %p897_p5 = pnand %p896_p3, %p890_p0 }
  0x58   : > { %210 = vxpose.xlu0.b32.start.end [1/1] (short) %v176_v2, 128 }
  0x9b   : > { %v194_v3 = vpop.trf.xlu0 }
  0x9c   : > { %778 = vmatprep.mubr.msk.f32.mxu0 %vm242_vm1, %v194_v3 }
  0x9f   : > { %v195_v4 = vpop.trf.xlu0 }
  0xa0   : > { %779 = vmatmul.mubr.msk.f32.vlgmr.msra.gmra.mrb[0].mxu0 %vm242_vm1, %v195_v4 }
  0xa3   : > { %v196_v5 = vpop.trf.xlu0 }
  0xa4   : > { %781 = vmatprep.mubr.msk.f32.mxu0 %vm242_vm1, %v196_v5 }
  0xa7   : > { %v197_v6 = vpop.trf.xlu0 }
  0xa8   : > { %782 = vmatmul.mubr.msk.f32.gmra.mrb[2].mxu0 %vm242_vm1, %v197_v6 }
  0xab   : > { %v198_v7 = vpop.trf.xlu0 }
  0xac   : > { %784 = vmatprep.mubr.msk.f32.mxu0 %vm242_vm1, %v198_v7 }
  0xaf   : > { %v199_v8 = vpop.trf.xlu0 }
  0xb0   : > { %785 = vmatmul.mubr.msk.f32.gmra.mrb[4].mxu0 %vm242_vm1, %v199_v8 }
  0xb3   : > { %v200_v9 = vpop.trf.xlu0 }
  0xb4   : > { %787 = vmatprep.mubr.msk.f32.mxu0 %vm242_vm1, %v200_v9 }
  0xb7   : > { %v201_v10 = vpop.trf.xlu0 }
  0xb8   : > { %788 = vmatmul.mubr.msk.f32.gmra.mrb[6].mxu0 %vm242_vm1, %v201_v10 }
  0xbb   : > { %v202_v11 = vpop.trf.xlu0 }
  0xbc   : > { %790 = vmatprep.mubr.msk.f32.mxu0 %vm242_vm1, %v202_v11 }
  0xbf   : > { %v203_v12 = vpop.trf.xlu0 }
  0xc0   : > { %791 = vmatmul.mubr.msk.f32.gmra.mrb[8].mxu0 %vm242_vm1, %v203_v12 }
  0xc3   : > { %v204_v13 = vpop.trf.xlu0 }
  0xc4   : > { %793 = vmatprep.mubr.msk.f32.mxu0 %vm242_vm1, %v204_v13 }
  0xc7   : > { %v205_v14 = vpop.trf.xlu0 }
  0xc8   : > { %794 = vmatmul.mubr.msk.f32.gmra.mrb[10].mxu0 %vm242_vm1, %v205_v14 }
  0xcb   : > { %v206_v15 = vpop.trf.xlu0 }
  0xcc   : > { %796 = vmatprep.mubr.msk.f32.mxu0 %vm242_vm1, %v206_v15 }
  0xcf   : > { %v207_v16 = vpop.trf.xlu0 }
  0xd0   : > { %797 = vmatmul.mubr.msk.f32.gmra.mrb[12].mxu0 %vm242_vm1, %v207_v16 }
  0xd3   : > { %v208_v17 = vpop.trf.xlu0 }
  0xd4   : > { %799 = vmatprep.mubr.msk.f32.mxu0 %vm242_vm1, %v208_v17 }
  0xd7   : > { %v209_v18 = vpop.trf.xlu0 }
  0xd8   : > { %800 = vmatmul.mubr.msk.f32.gmra.mrb[14].mxu0 %vm242_vm1, %v209_v18 }
  0xdb   : > { %v226_v19 = vpop.trf.xlu0 }
  0xdc   : > { %802 = vmatprep.mubr.msk.f32.mxu1 %vm242_vm1, %v226_v19 }
  0xdf   : > { %v227_v20 = vpop.trf.xlu0 }
  0xe0   : > { %803 = vmatmul.mubr.msk.f32.vlgmr.msra.gmra.mrb[0].mxu1 %vm242_vm1, %v227_v20 }
  0xe3   : > { %v228_v21 = vpop.trf.xlu0 }
  0xe4   : > { %805 = vmatprep.mubr.msk.f32.mxu1 %vm242_vm1, %v228_v21 }
  0xe7   : > { %v229_v22 = vpop.trf.xlu0 }
  0xe8   : > { %806 = vmatmul.mubr.msk.f32.gmra.mrb[2].mxu1 %vm242_vm1, %v229_v22 }
  0xeb   : > { %v230_v23 = vpop.trf.xlu0 }
  0xec   : > { %808 = vmatprep.mubr.msk.f32.mxu1 %vm242_vm1, %v230_v23 }
  0xef   : > { %v231_v24 = vpop.trf.xlu0 }
  0xf0   : > { %809 = vmatmul.mubr.msk.f32.gmra.mrb[4].mxu1 %vm242_vm1, %v231_v24 }
  0xf3   : > { %v232_v25 = vpop.trf.xlu0 }
  0xf4   : > { %811 = vmatprep.mubr.msk.f32.mxu1 %vm242_vm1, %v232_v25 }
  0xf7   : > { %v233_v26 = vpop.trf.xlu0 }
  0xf8   : > { %812 = vmatmul.mubr.msk.f32.gmra.mrb[6].mxu1 %vm242_vm1, %v233_v26 }
  0xfb   : > { %v234_v27 = vpop.trf.xlu0 }
  0xfc   : > { %814 = vmatprep.mubr.msk.f32.mxu1 %vm242_vm1, %v234_v27 }
  0xff   : > { %v235_v28 = vpop.trf.xlu0 }
 0x100   : > { %815 = vmatmul.mubr.msk.f32.gmra.mrb[8].mxu1 %vm242_vm1, %v235_v28 }
 0x103   : > { %v236_v29 = vpop.trf.xlu0 }
 0x104   : > { %817 = vmatprep.mubr.msk.f32.mxu1 %vm242_vm1, %v236_v29 }
 0x107   : > { %v237_v30 = vpop.trf.xlu0 }
 0x108   : > { %818 = vmatmul.mubr.msk.f32.gmra.mrb[10].mxu1 %vm242_vm1, %v237_v30 }
 0x10b   : > { %v238_v31 = vpop.trf.xlu0 }
 0x10c   : > { %820 = vmatprep.mubr.msk.f32.mxu1 %vm242_vm1, %v238_v31 }
 0x10f   : > { %v239_v32 = vpop.trf.xlu0 }
 0x110   : > { %821 = vmatmul.mubr.msk.f32.gmra.mrb[12].mxu1 %vm242_vm1, %v239_v32 }
 0x113   : > { %v240_v33 = vpop.trf.xlu0 }
 0x114   : > { %823 = vmatprep.mubr.msk.f32.mxu1 %vm242_vm1, %v240_v33 }
 0x117   : > { %v241_v34 = vpop.trf.xlu0 }
 0x118   : > { %824 = vmatmul.mubr.msk.f32.gmra.mrb[14].mxu1 %vm242_vm1, %v241_v34 }
 0x173   : > { %v780_v35 = vpop.f32.mrb[0].mxu0 }
 0x174   : > { %569 = vst [vmem:[%s1083_s4 + $0x8] sm:$0xff] %v780_v35  ;;  %v409_v36 = vpop.f32.mrb[1].mxu0 }
 0x175   : > { %568 = vst [vmem:[%s1083_s4] sm:$0xff] %v409_v36 }
 0x17b   : > { %v783_v37 = vpop.f32.mrb[2].mxu0 }
 0x17c   : > { %571 = vst [vmem:[%s1083_s4 + $0x18] sm:$0xff] %v783_v37  ;;  %v419_v38 = vpop.f32.mrb[3].mxu0 }
 0x17d   : > { %570 = vst [vmem:[%s1083_s4 + $0x10] sm:$0xff] %v419_v38 }
 0x183   : > { %v786_v39 = vpop.f32.mrb[4].mxu0 }
 0x184   : > { %573 = vst [vmem:[%s1083_s4 + $0x28] sm:$0xff] %v786_v39  ;;  %v429_v40 = vpop.f32.mrb[5].mxu0 }
 0x185   : > { %572 = vst [vmem:[%s1083_s4 + $0x20] sm:$0xff] %v429_v40 }
 0x18b   : > { %v789_v41 = vpop.f32.mrb[6].mxu0 }
 0x18c   : > { %575 = vst [vmem:[%s1083_s4 + $0x38] sm:$0xff] %v789_v41  ;;  %v439_v42 = vpop.f32.mrb[7].mxu0 }
 0x18d   : > { %574 = vst [vmem:[%s1083_s4 + $0x30] sm:$0xff] %v439_v42 }
 0x193   : > { %v792_v43 = vpop.f32.mrb[8].mxu0 }
 0x194   : > { %577 = vst [vmem:[%s1083_s4 + $0x48] sm:$0xff] %v792_v43  ;;  %v449_v44 = vpop.f32.mrb[9].mxu0 }
 0x195   : > { %576 = vst [vmem:[%s1083_s4 + $0x40] sm:$0xff] %v449_v44 }
 0x19b   : > { %v795_v45 = vpop.f32.mrb[10].mxu0 }
 0x19c   : > { %579 = vst [vmem:[%s1083_s4 + $0x58] sm:$0xff] %v795_v45  ;;  %v459_v46 = vpop.f32.mrb[11].mxu0 }
 0x19d   : > { %578 = vst [vmem:[%s1083_s4 + $0x50] sm:$0xff] %v459_v46 }
 0x1a3   : > { %v798_v47 = vpop.f32.mrb[12].mxu0 }
 0x1a4   : > { %581 = vst [vmem:[%s1083_s4 + $0x68] sm:$0xff] %v798_v47  ;;  %v469_v48 = vpop.f32.mrb[13].mxu0 }
 0x1a5   : > { %580 = vst [vmem:[%s1083_s4 + $0x60] sm:$0xff] %v469_v48 }
 0x1ab   : > { %v801_v49 = vpop.f32.mrb[14].mxu0 }
 0x1ac   : > { %583 = vst [vmem:[%s1083_s4 + $0x78] sm:$0xff] %v801_v49  ;;  %v479_v50 = vpop.f32.mrb[15].mxu0 }
 0x1ad   : > { %582 = vst [vmem:[%s1083_s4 + $0x70] sm:$0xff] %v479_v50 }
 0x1b3   : > { %v804_v51 = vpop.f32.mrb[0].mxu1 }
 0x1b4   : > { %585 = vst [vmem:[%s1083_s4 + $0x88] sm:$0xff] %v804_v51  ;;  %v489_v52 = vpop.f32.mrb[1].mxu1 }
 0x1b5   : > { %584 = vst [vmem:[%s1083_s4 + $0x80] sm:$0xff] %v489_v52 }
 0x1bb   : > { %v807_v53 = vpop.f32.mrb[2].mxu1 }
 0x1bc   : > { %587 = vst [vmem:[%s1083_s4 + $0x98] sm:$0xff] %v807_v53  ;;  %v499_v54 = vpop.f32.mrb[3].mxu1 }
 0x1bd   : > { %586 = vst [vmem:[%s1083_s4 + $0x90] sm:$0xff] %v499_v54 }
 0x1c3   : > { %v810_v55 = vpop.f32.mrb[4].mxu1 }
 0x1c4   : > { %589 = vst [vmem:[%s1083_s4 + $0xa8] sm:$0xff] %v810_v55  ;;  %v509_v56 = vpop.f32.mrb[5].mxu1 }
 0x1c5   : > { %588 = vst [vmem:[%s1083_s4 + $0xa0] sm:$0xff] %v509_v56 }
 0x1cb   : > { %v813_v57 = vpop.f32.mrb[6].mxu1 }
 0x1cc   : > { %591 = vst [vmem:[%s1083_s4 + $0xb8] sm:$0xff] %v813_v57  ;;  %v519_v58 = vpop.f32.mrb[7].mxu1 }
 0x1cd   : > { %590 = vst [vmem:[%s1083_s4 + $0xb0] sm:$0xff] %v519_v58 }
 0x1d3   : > { %v816_v59 = vpop.f32.mrb[8].mxu1 }
 0x1d4   : > { %593 = vst [vmem:[%s1083_s4 + $0xc8] sm:$0xff] %v816_v59  ;;  %v529_v60 = vpop.f32.mrb[9].mxu1 }
 0x1d5   : > { %592 = vst [vmem:[%s1083_s4 + $0xc0] sm:$0xff] %v529_v60 }
 0x1db   : > { %v819_v61 = vpop.f32.mrb[10].mxu1 }
 0x1dc   : > { %595 = vst [vmem:[%s1083_s4 + $0xd8] sm:$0xff] %v819_v61  ;;  %v539_v62 = vpop.f32.mrb[11].mxu1 }
 0x1dd   : > { %594 = vst [vmem:[%s1083_s4 + $0xd0] sm:$0xff] %v539_v62 }
 0x1e3   : > { %v822_v63 = vpop.f32.mrb[12].mxu1 }
 0x1e4   : > { %597 = vst [vmem:[%s1083_s4 + $0xe8] sm:$0xff] %v822_v63  ;;  %v549_v0 = vpop.f32.mrb[13].mxu1 }
 0x1e5   : > { %596 = vst [vmem:[%s1083_s4 + $0xe0] sm:$0xff] %v549_v0 }
 0x1eb   : > { %v825_v1 = vpop.f32.mrb[14].mxu1 }
 0x1ec   : > { %599 = vst [vmem:[%s1083_s4 + $0xf8] sm:$0xff] %v825_v1  ;;  %v559_v2 = vpop.f32.mrb[15].mxu1 }
 0x1ed   : > { %598 = vst [vmem:[%s1083_s4 + $0xf0] sm:$0xff] %v559_v2 }
 0x1ee   : > { %900 = shalt.err (!%p897_p5)
}
 0x1ef   : > { %s901_s24 = scalar_lea.hbm %s1120_s15, 4096  ;;  %s905_s27 = scalar_lea.hbm %s1176_s2, 8192 }
 0x1f0   : > { %p902_p6 = scmp.ne.s32.totalorder %s1120_s15, %s901_s24  ;;  %p906_p10 = scmp.lt.u32.totalorder %s1120_s15, %s1176_s2 }
 0x1f1   : > { %p907_p11 = scmp.lt.u32.totalorder %s905_s27, %s901_s24  ;;  %p909_p13 = scmp.lt.u32.totalorder %s901_s24, %s1120_s15 }
 0x1f2   : > { %p903_p7 = pnand %p902_p6, %p1025_p4 }
 0x1f3   : > { %p908_p12 = por %p907_p11, %p906_p10 }
 0x1f4   : > { %p904_p9 = pneg %p903_p7 }
 0x1f5   : > { %p910_p0 = por %p909_p13, %p908_p12 }
 0x1f7   : > { %p911_p1 = pnand %p910_p0, %p904_p9 }
 0x1f9   : > { %914 = shalt.err (!%p911_p1)
}
 0x1fa   : > { %s968_s30 = smov 128   ;;  %s969_s3 = smov 8  }
 0x1fb   : > { %828 = dma.vmem_to_hbm [thread:$0]  (%p1025_p4), %s1122_s6, 4096, %s1120_s15, %s1128_s16, %s968_s30, %s968_s30, %s969_s3  }
 0x1fc PF: > { %p834_p2 = scmp.ge.s32.totalorder %s965_s14, 2  ;;  %s631_s4 = sand.u32 1, %s945_s9  }
 0x1fd   : > { %s632_s5 = scalar_lea.sflag [#allocation3], %s631_s4 }
 0x1fe   : > { %p831_p3 = pnand %p834_p2, %p1032_p8 }
 0x200   : > { %940 = dma.done.wait (!%p831_p3), %s632_s5, 4096  }
 0x201   : > { %942 = vsyncadd (!%p831_p3), %s632_s5, 4294963200  ;;  %s15_s14 = sadd.s32 1, %s965_s14   ;;  %s1179_s9 = smov %s949_s10 }
 0x202   : > { %p12_p5 = scmp.ge.s32.totalorder %s15_s14, 4   ;;  %s1180_s10 = smov %s953_s11 }
 0x203   : > { %s1181_s11 = smov %s1038_s22  ;;  %s1182_s12 = smov %s961_s13 }
 0x204   : > { %s1183_s13 = smov %s1185_s17  ;;  %14 = sbr.rel (!%p12_p5) target bundleno = 4 (0x4), region = 63 }
 0x20b   :  { %637 = vsyncpa [#allocation3], 1 }
 0x20c   :  { %639 = vsyncpa [#allocation3 + $0x1], 1 }

// kernel: tpu_custom_call.1
= control target key start
LH: loop header
LB: loop body
LE: loop exit
PB: predicated region body
PF: predicated region fallthrough
CT: control target
= control target key end

     0   :  { %vm92_vm0 = vcmask 23552   ;;  %s1581_s0 = inlined_call_operand.vmem [shape: f32[512,3], index: 0, kind: input, shape index: {}]   ;;  %s1582_s1 = inlined_call_operand.vmem [shape: f32[128,3], index: 1, kind: input, shape index: {}]   ;;  %s1583_s2 = inlined_call_operand.hbm [shape: f32[512,128], index: 2, kind: output, shape index: {}]  }
   0x1   :  { %v76_v0 = vld [vmem:[%s1582_s1] sm:$0xff]  ;;  %v77_v1 = vld [vmem:[%s1582_s1 + $0x8] sm:$0xff]  ;;  %v78_v2 = vld [vmem:[%s1582_s1 + $0x10] sm:$0xff] }
   0x2   :  { %v1086_v3 = vpack.c.bf16 %v77_v1, %v76_v0  ;;  %vm1206_vm1 = vmpackc.low %vm92_vm0, %vm92_vm0  ;;  %v79_v5 = vld [vmem:[%s1582_s1 + $0x18] sm:$0xff]  ;;  %v12_v7 = vld [vmem:[%s1581_s0] sm:$0xff] }
   0x3   :  { %v1092_v6 = vpack.c.bf16 %v79_v5, %v78_v2  ;;  %v80_v8 = vld [vmem:[%s1582_s1 + $0x20] sm:$0xff]  ;;  %v81_v9 = vld [vmem:[%s1582_s1 + $0x28] sm:$0xff]  ;;  %990 = vmatprep.mubr.msk.f32.mxu0 %vm92_vm0, %v12_v7  ;;  %v82_v12 = vld [vmem:[%s1582_s1 + $0x30] sm:$0xff] }
   0x4   :  { %1088 = vmatprep.subr.msk.bf16.mxu0 %vm1206_vm1, %v1086_v3  ;;  %1134 = vmatprep.subr.msk.bf16.mxu1 %vm1206_vm1, %v1086_v3  ;;  %v44_v10 = vld [vmem:[%s1581_s0 + $0x100] sm:$0xff]  ;;  %v1098_v11 = vpack.c.bf16 %v81_v9, %v80_v8  ;;  %v83_v13 = vld [vmem:[%s1582_s1 + $0x38] sm:$0xff]  ;;  %v85_v16 = vld [vmem:[%s1582_s1 + $0x48] sm:$0xff] }
   0x5   :  { %1091 = vmatpush3.bf16.xpose.msk.msra.mxu0 %vm1206_vm1, %v1086_v3  ;;  %1142 = vmatpush3.bf16.xpose.msk.msra.mxu1 %vm1206_vm1, %v1086_v3  ;;  %v1104_v14 = vpack.c.bf16 %v83_v13, %v82_v12  ;;  %v84_v15 = vld [vmem:[%s1582_s1 + $0x40] sm:$0xff] }
   0x6   :  { %1094 = vmatprep.subr.msk.bf16.mxu0 %vm1206_vm1, %v1092_v6  ;;  %1135 = vmatprep.subr.msk.bf16.mxu1 %vm1206_vm1, %v1092_v6  ;;  %v1110_v17 = vpack.c.bf16 %v85_v16, %v84_v15 }
   0x7   :  { %1038 = vmatprep.mubr.msk.f32.mxu1 %vm92_vm0, %v44_v10 }
   0xd   :  { %1097 = vmatpush3.bf16.xpose.msk.msra.mxu0 %vm1206_vm1, %v1092_v6  ;;  %1143 = vmatpush3.bf16.xpose.msk.msra.mxu1 %vm1206_vm1, %v1092_v6 }
   0xe   :  { %1100 = vmatprep.subr.msk.bf16.mxu0 %vm1206_vm1, %v1098_v11  ;;  %1136 = vmatprep.subr.msk.bf16.mxu1 %vm1206_vm1, %v1098_v11 }
  0x15   :  { %1103 = vmatpush3.bf16.xpose.msk.msra.mxu0 %vm1206_vm1, %v1098_v11  ;;  %1144 = vmatpush3.bf16.xpose.msk.msra.mxu1 %vm1206_vm1, %v1098_v11 }
  0x16   :  { %1106 = vmatprep.subr.msk.bf16.mxu0 %vm1206_vm1, %v1104_v14  ;;  %1137 = vmatprep.subr.msk.bf16.mxu1 %vm1206_vm1, %v1104_v14 }
  0x17   :  { %7 = vsyncpa [#allocation3], 0  ;;  %v86_v18 = vld [vmem:[%s1582_s1 + $0x50] sm:$0xff]  ;;  %v87_v19 = vld [vmem:[%s1582_s1 + $0x58] sm:$0xff] }
  0x18   :  { %v1116_v20 = vpack.c.bf16 %v87_v19, %v86_v18  ;;  %v88_v21 = vld [vmem:[%s1582_s1 + $0x60] sm:$0xff]  ;;  %v89_v22 = vld [vmem:[%s1582_s1 + $0x68] sm:$0xff]  ;;  %v90_v24 = vld [vmem:[%s1582_s1 + $0x70] sm:$0xff] }
  0x19   :  { %v1122_v23 = vpack.c.bf16 %v89_v22, %v88_v21  ;;  %v91_v25 = vld [vmem:[%s1582_s1 + $0x78] sm:$0xff]  ;;  %v13_v27 = vld [vmem:[%s1581_s0 + $0x8] sm:$0xff]  ;;  %v14_v29 = vld [vmem:[%s1581_s0 + $0x10] sm:$0xff] }
  0x1a   :  { %v1128_v26 = vpack.c.bf16 %v91_v25, %v90_v24  ;;  %v45_v28 = vld [vmem:[%s1581_s0 + $0x108] sm:$0xff]  ;;  %v46_v30 = vld [vmem:[%s1581_s0 + $0x110] sm:$0xff]  ;;  %v15_v31 = vld [vmem:[%s1581_s0 + $0x18] sm:$0xff] }
  0x1b   :  { %v47_v32 = vld [vmem:[%s1581_s0 + $0x118] sm:$0xff]  ;;  %v16_v33 = vld [vmem:[%s1581_s0 + $0x20] sm:$0xff]  ;;  %v17_v35 = vld [vmem:[%s1581_s0 + $0x28] sm:$0xff] }
  0x1c   :  { %v48_v34 = vld [vmem:[%s1581_s0 + $0x120] sm:$0xff]  ;;  %v49_v36 = vld [vmem:[%s1581_s0 + $0x128] sm:$0xff]  ;;  %v18_v37 = vld [vmem:[%s1581_s0 + $0x30] sm:$0xff] }
  0x1d   :  { %1109 = vmatpush3.bf16.xpose.msk.msra.mxu0 %vm1206_vm1, %v1104_v14  ;;  %1145 = vmatpush3.bf16.xpose.msk.msra.mxu1 %vm1206_vm1, %v1104_v14  ;;  %v50_v38 = vld [vmem:[%s1581_s0 + $0x130] sm:$0xff]  ;;  %v19_v39 = vld [vmem:[%s1581_s0 + $0x38] sm:$0xff]  ;;  %v20_v41 = vld [vmem:[%s1581_s0 + $0x40] sm:$0xff] }
  0x1e   :  { %1112 = vmatprep.subr.msk.bf16.mxu0 %vm1206_vm1, %v1110_v17  ;;  %1138 = vmatprep.subr.msk.bf16.mxu1 %vm1206_vm1, %v1110_v17  ;;  %v51_v40 = vld [vmem:[%s1581_s0 + $0x138] sm:$0xff]  ;;  %v52_v42 = vld [vmem:[%s1581_s0 + $0x140] sm:$0xff]  ;;  %v21_v43 = vld [vmem:[%s1581_s0 + $0x48] sm:$0xff] }
  0x1f   :  { %v53_v44 = vld [vmem:[%s1581_s0 + $0x148] sm:$0xff]  ;;  %v22_v45 = vld [vmem:[%s1581_s0 + $0x50] sm:$0xff]  ;;  %v23_v47 = vld [vmem:[%s1581_s0 + $0x58] sm:$0xff] }
  0x20   :  { %v54_v46 = vld [vmem:[%s1581_s0 + $0x150] sm:$0xff]  ;;  %v55_v48 = vld [vmem:[%s1581_s0 + $0x158] sm:$0xff]  ;;  %v24_v49 = vld [vmem:[%s1581_s0 + $0x60] sm:$0xff] }
  0x21   :  { %v56_v50 = vld [vmem:[%s1581_s0 + $0x160] sm:$0xff]  ;;  %v25_v51 = vld [vmem:[%s1581_s0 + $0x68] sm:$0xff]  ;;  %v26_v53 = vld [vmem:[%s1581_s0 + $0x70] sm:$0xff] }
  0x22   :  { %v57_v52 = vld [vmem:[%s1581_s0 + $0x168] sm:$0xff]  ;;  %v58_v54 = vld [vmem:[%s1581_s0 + $0x170] sm:$0xff]  ;;  %v27_v55 = vld [vmem:[%s1581_s0 + $0x78] sm:$0xff] }
  0x23   :  { %v59_v56 = vld [vmem:[%s1581_s0 + $0x178] sm:$0xff]  ;;  %v28_v57 = vld [vmem:[%s1581_s0 + $0x80] sm:$0xff]  ;;  %v29_v59 = vld [vmem:[%s1581_s0 + $0x88] sm:$0xff] }
  0x24   :  { %v60_v58 = vld [vmem:[%s1581_s0 + $0x180] sm:$0xff]  ;;  %v61_v60 = vld [vmem:[%s1581_s0 + $0x188] sm:$0xff]  ;;  %v30_v61 = vld [vmem:[%s1581_s0 + $0x90] sm:$0xff] }
  0x25   :  { %1115 = vmatpush3.bf16.xpose.msk.msra.mxu0 %vm1206_vm1, %v1110_v17  ;;  %1146 = vmatpush3.bf16.xpose.msk.msra.mxu1 %vm1206_vm1, %v1110_v17  ;;  %v62_v62 = vld [vmem:[%s1581_s0 + $0x190] sm:$0xff]  ;;  %v31_v63 = vld [vmem:[%s1581_s0 + $0x98] sm:$0xff]  ;;  %v32_v1 = vld [vmem:[%s1581_s0 + $0xa0] sm:$0xff] }
  0x26   :  { %1118 = vmatprep.subr.msk.bf16.mxu0 %vm1206_vm1, %v1116_v20  ;;  %1139 = vmatprep.subr.msk.bf16.mxu1 %vm1206_vm1, %v1116_v20  ;;  %v63_v0 = vld [vmem:[%s1581_s0 + $0x198] sm:$0xff]  ;;  %v64_v2 = vld [vmem:[%s1581_s0 + $0x1a0] sm:$0xff]  ;;  %v33_v3 = vld [vmem:[%s1581_s0 + $0xa8] sm:$0xff] }
  0x27   :  { %v65_v4 = vld [vmem:[%s1581_s0 + $0x1a8] sm:$0xff]  ;;  %v34_v5 = vld [vmem:[%s1581_s0 + $0xb0] sm:$0xff]  ;;  %v35_v7 = vld [vmem:[%s1581_s0 + $0xb8] sm:$0xff] }
  0x28   :  { %v66_v6 = vld [vmem:[%s1581_s0 + $0x1b0] sm:$0xff]  ;;  %v67_v8 = vld [vmem:[%s1581_s0 + $0x1b8] sm:$0xff]  ;;  %v36_v9 = vld [vmem:[%s1581_s0 + $0xc0] sm:$0xff] }
  0x29   :  { %v68_v10 = vld [vmem:[%s1581_s0 + $0x1c0] sm:$0xff]  ;;  %v37_v11 = vld [vmem:[%s1581_s0 + $0xc8] sm:$0xff]  ;;  %v38_v13 = vld [vmem:[%s1581_s0 + $0xd0] sm:$0xff] }
  0x2a   :  { %v69_v12 = vld [vmem:[%s1581_s0 + $0x1c8] sm:$0xff]  ;;  %v70_v14 = vld [vmem:[%s1581_s0 + $0x1d0] sm:$0xff]  ;;  %v39_v15 = vld [vmem:[%s1581_s0 + $0xd8] sm:$0xff] }
  0x2b   :  { %v71_v16 = vld [vmem:[%s1581_s0 + $0x1d8] sm:$0xff]  ;;  %v40_v17 = vld [vmem:[%s1581_s0 + $0xe0] sm:$0xff]  ;;  %v41_v19 = vld [vmem:[%s1581_s0 + $0xe8] sm:$0xff] }
  0x2c   :  { %v72_v18 = vld [vmem:[%s1581_s0 + $0x1e0] sm:$0xff]  ;;  %v42_v21 = vld [vmem:[%s1581_s0 + $0xf0] sm:$0xff]  ;;  %v75_v24 = vld [vmem:[%s1581_s0 + $0x1f8] sm:$0xff] }
  0x2d   :  { %1121 = vmatpush3.bf16.xpose.msk.msra.mxu0 %vm1206_vm1, %v1116_v20  ;;  %1147 = vmatpush3.bf16.xpose.msk.msra.mxu1 %vm1206_vm1, %v1116_v20  ;;  %v73_v20 = vld [vmem:[%s1581_s0 + $0x1e8] sm:$0xff]  ;;  %v74_v22 = vld [vmem:[%s1581_s0 + $0x1f0] sm:$0xff] }
  0x2e   :  { %1124 = vmatprep.subr.msk.bf16.mxu0 %vm1206_vm1, %v1122_v23  ;;  %1140 = vmatprep.subr.msk.bf16.mxu1 %vm1206_vm1, %v1122_v23 }
  0x35   :  { %1127 = vmatpush3.bf16.xpose.msk.msra.mxu0 %vm1206_vm1, %v1122_v23  ;;  %1148 = vmatpush3.bf16.xpose.msk.msra.mxu1 %vm1206_vm1, %v1122_v23  ;;  %v43_v23 = vld [vmem:[%s1581_s0 + $0xf8] sm:$0xff]  ;;  %s1177_s0 = smov [#allocation2]  }
  0x36   :  { %1130 = vmatprep.subr.msk.bf16.mxu0 %vm1206_vm1, %v1128_v26  ;;  %1141 = vmatprep.subr.msk.bf16.mxu1 %vm1206_vm1, %v1128_v26  ;;  %s787_s24 = sshll.u32 %s1177_s0, 4  ;;  %s788_s24 = int_to_ptr.vmem [resolvable:$true] %s787_s24 }
  0x37   :  { %s1153_s25 = scalar_lea.vmem %s788_s24, 8192  ;;  %p1158_p1 = scmp.lt.s32.totalorder %s788_s24, %s788_s24 }
  0x38   :  { %p1154_p0 = scmp.ne.s32.totalorder %s788_s24, %s1153_s25  ;;  %p1159_p2 = scmp.lt.s32.totalorder %s1153_s25, %s1153_s25 }
  0x3a   :  { %p1160_p3 = por %p1159_p2, %p1158_p1 }
  0x3c   :  { %p1161_p4 = pnand %p1160_p3, %p1154_p0 }
  0x3d   :  { %1133 = vmatpush3.bf16.xpose.msk.msra.mxu0 %vm1206_vm1, %v1128_v26  ;;  %1149 = vmatpush3.bf16.xpose.msk.msra.mxu1 %vm1206_vm1, %v1128_v26 }
  0x44   :  { %991 = vmatmul.mubr.msk.f32.vlgmr.msra.gmra.mrb[0].mxu0 %vm92_vm0, %v13_v27  ;;  %1039 = vmatmul.mubr.msk.f32.vlgmr.msra.gmra.mrb[0].mxu1 %vm92_vm0, %v45_v28 }
  0x45   :  { %993 = vmatprep.mubr.msk.f32.mxu0 %vm92_vm0, %v14_v29  ;;  %1041 = vmatprep.mubr.msk.f32.mxu1 %vm92_vm0, %v46_v30 }
  0x48   :  { %994 = vmatmul.mubr.msk.f32.gmra.mrb[2].mxu0 %vm92_vm0, %v15_v31  ;;  %1042 = vmatmul.mubr.msk.f32.gmra.mrb[2].mxu1 %vm92_vm0, %v47_v32 }
  0x49   :  { %996 = vmatprep.mubr.msk.f32.mxu0 %vm92_vm0, %v16_v33  ;;  %1044 = vmatprep.mubr.msk.f32.mxu1 %vm92_vm0, %v48_v34 }
  0x4c   :  { %997 = vmatmul.mubr.msk.f32.gmra.mrb[4].mxu0 %vm92_vm0, %v17_v35  ;;  %1045 = vmatmul.mubr.msk.f32.gmra.mrb[4].mxu1 %vm92_vm0, %v49_v36 }
  0x4d   :  { %999 = vmatprep.mubr.msk.f32.mxu0 %vm92_vm0, %v18_v37  ;;  %1047 = vmatprep.mubr.msk.f32.mxu1 %vm92_vm0, %v50_v38 }
  0x50   :  { %1000 = vmatmul.mubr.msk.f32.gmra.mrb[6].mxu0 %vm92_vm0, %v19_v39  ;;  %1048 = vmatmul.mubr.msk.f32.gmra.mrb[6].mxu1 %vm92_vm0, %v51_v40 }
  0x51   :  { %1002 = vmatprep.mubr.msk.f32.mxu0 %vm92_vm0, %v20_v41  ;;  %1050 = vmatprep.mubr.msk.f32.mxu1 %vm92_vm0, %v52_v42 }
  0x54   :  { %1003 = vmatmul.mubr.msk.f32.gmra.mrb[8].mxu0 %vm92_vm0, %v21_v43  ;;  %1051 = vmatmul.mubr.msk.f32.gmra.mrb[8].mxu1 %vm92_vm0, %v53_v44 }
  0x55   :  { %1005 = vmatprep.mubr.msk.f32.mxu0 %vm92_vm0, %v22_v45  ;;  %1053 = vmatprep.mubr.msk.f32.mxu1 %vm92_vm0, %v54_v46 }
  0x58   :  { %1006 = vmatmul.mubr.msk.f32.gmra.mrb[10].mxu0 %vm92_vm0, %v23_v47  ;;  %1054 = vmatmul.mubr.msk.f32.gmra.mrb[10].mxu1 %vm92_vm0, %v55_v48 }
  0x59   :  { %1008 = vmatprep.mubr.msk.f32.mxu0 %vm92_vm0, %v24_v49  ;;  %1056 = vmatprep.mubr.msk.f32.mxu1 %vm92_vm0, %v56_v50 }
  0x5c   :  { %1009 = vmatmul.mubr.msk.f32.gmra.mrb[12].mxu0 %vm92_vm0, %v25_v51  ;;  %1057 = vmatmul.mubr.msk.f32.gmra.mrb[12].mxu1 %vm92_vm0, %v57_v52 }
  0x5d   :  { %1011 = vmatprep.mubr.msk.f32.mxu0 %vm92_vm0, %v26_v53  ;;  %1059 = vmatprep.mubr.msk.f32.mxu1 %vm92_vm0, %v58_v54 }
  0x60   :  { %1012 = vmatmul.mubr.msk.f32.gmra.mrb[14].mxu0 %vm92_vm0, %v27_v55  ;;  %1060 = vmatmul.mubr.msk.f32.gmra.mrb[14].mxu1 %vm92_vm0, %v59_v56 }
  0x61   :  { %1014 = vmatprep.mubr.msk.f32.mxu0 %vm92_vm0, %v28_v57  ;;  %1062 = vmatprep.mubr.msk.f32.mxu1 %vm92_vm0, %v60_v58 }
  0x64   :  { %1015 = vmatmul.mubr.msk.f32.gmra.mrb[16].mxu0 %vm92_vm0, %v29_v59  ;;  %1063 = vmatmul.mubr.msk.f32.gmra.mrb[16].mxu1 %vm92_vm0, %v61_v60 }
  0x65   :  { %1017 = vmatprep.mubr.msk.f32.mxu0 %vm92_vm0, %v30_v61  ;;  %1065 = vmatprep.mubr.msk.f32.mxu1 %vm92_vm0, %v62_v62 }
  0x68   :  { %1018 = vmatmul.mubr.msk.f32.gmra.mrb[18].mxu0 %vm92_vm0, %v31_v63  ;;  %1066 = vmatmul.mubr.msk.f32.gmra.mrb[18].mxu1 %vm92_vm0, %v63_v0 }
  0x69   :  { %1020 = vmatprep.mubr.msk.f32.mxu0 %vm92_vm0, %v32_v1  ;;  %1068 = vmatprep.mubr.msk.f32.mxu1 %vm92_vm0, %v64_v2 }
  0x6c   :  { %1021 = vmatmul.mubr.msk.f32.gmra.mrb[20].mxu0 %vm92_vm0, %v33_v3  ;;  %1069 = vmatmul.mubr.msk.f32.gmra.mrb[20].mxu1 %vm92_vm0, %v65_v4 }
  0x6d   :  { %1023 = vmatprep.mubr.msk.f32.mxu0 %vm92_vm0, %v34_v5  ;;  %1071 = vmatprep.mubr.msk.f32.mxu1 %vm92_vm0, %v66_v6 }
  0x70   :  { %1024 = vmatmul.mubr.msk.f32.gmra.mrb[22].mxu0 %vm92_vm0, %v35_v7  ;;  %1072 = vmatmul.mubr.msk.f32.gmra.mrb[22].mxu1 %vm92_vm0, %v67_v8 }
  0x71   :  { %1026 = vmatprep.mubr.msk.f32.mxu0 %vm92_vm0, %v36_v9  ;;  %1074 = vmatprep.mubr.msk.f32.mxu1 %vm92_vm0, %v68_v10 }
  0x74   :  { %1027 = vmatmul.mubr.msk.f32.gmra.mrb[24].mxu0 %vm92_vm0, %v37_v11  ;;  %1075 = vmatmul.mubr.msk.f32.gmra.mrb[24].mxu1 %vm92_vm0, %v69_v12 }
  0x75   :  { %1029 = vmatprep.mubr.msk.f32.mxu0 %vm92_vm0, %v38_v13  ;;  %1077 = vmatprep.mubr.msk.f32.mxu1 %vm92_vm0, %v70_v14 }
  0x78   :  { %1030 = vmatmul.mubr.msk.f32.gmra.mrb[26].mxu0 %vm92_vm0, %v39_v15  ;;  %1078 = vmatmul.mubr.msk.f32.gmra.mrb[26].mxu1 %vm92_vm0, %v71_v16 }
  0x79   :  { %1032 = vmatprep.mubr.msk.f32.mxu0 %vm92_vm0, %v40_v17  ;;  %1080 = vmatprep.mubr.msk.f32.mxu1 %vm92_vm0, %v72_v18 }
  0x7c   :  { %1033 = vmatmul.mubr.msk.f32.gmra.mrb[28].mxu0 %vm92_vm0, %v41_v19  ;;  %1081 = vmatmul.mubr.msk.f32.gmra.mrb[28].mxu1 %vm92_vm0, %v73_v20 }
  0x7d   :  { %1035 = vmatprep.mubr.msk.f32.mxu0 %vm92_vm0, %v42_v21  ;;  %1083 = vmatprep.mubr.msk.f32.mxu1 %vm92_vm0, %v74_v22 }
  0x80   :  { %1036 = vmatmul.mubr.msk.f32.gmra.mrb[30].mxu0 %vm92_vm0, %v43_v23  ;;  %1084 = vmatmul.mubr.msk.f32.gmra.mrb[30].mxu1 %vm92_vm0, %v75_v24 }
 0x117   :  { %v992_v25 = vpop.f32.mrb[0].mxu0  ;;  %v1040_v26 = vpop.f32.mrb[0].mxu1 }
 0x118   :  { %719 = vst [vmem:[#allocation2 + $0x8] sm:$0xff] %v992_v25  ;;  %751 = vst [vmem:[#allocation2 + $0x108] sm:$0xff] %v1040_v26  ;;  %v399_v27 = vpop.f32.mrb[1].mxu0  ;;  %v559_v28 = vpop.f32.mrb[1].mxu1 }
 0x119   :  { %718 = vst [vmem:[#allocation2] sm:$0xff] %v399_v27  ;;  %750 = vst [vmem:[#allocation2 + $0x100] sm:$0xff] %v559_v28 }
 0x11b   :  { %v995_v29 = vpop.f32.mrb[2].mxu0  ;;  %v1043_v30 = vpop.f32.mrb[2].mxu1 }
 0x11c   :  { %721 = vst [vmem:[#allocation2 + $0x18] sm:$0xff] %v995_v29  ;;  %753 = vst [vmem:[#allocation2 + $0x118] sm:$0xff] %v1043_v30  ;;  %v409_v31 = vpop.f32.mrb[3].mxu0  ;;  %v569_v32 = vpop.f32.mrb[3].mxu1 }
 0x11d   :  { %720 = vst [vmem:[#allocation2 + $0x10] sm:$0xff] %v409_v31  ;;  %752 = vst [vmem:[#allocation2 + $0x110] sm:$0xff] %v569_v32 }
 0x11f   :  { %v998_v33 = vpop.f32.mrb[4].mxu0  ;;  %v1046_v34 = vpop.f32.mrb[4].mxu1 }
 0x120   :  { %723 = vst [vmem:[#allocation2 + $0x28] sm:$0xff] %v998_v33  ;;  %755 = vst [vmem:[#allocation2 + $0x128] sm:$0xff] %v1046_v34  ;;  %v419_v35 = vpop.f32.mrb[5].mxu0  ;;  %v579_v36 = vpop.f32.mrb[5].mxu1 }
 0x121   :  { %722 = vst [vmem:[#allocation2 + $0x20] sm:$0xff] %v419_v35  ;;  %754 = vst [vmem:[#allocation2 + $0x120] sm:$0xff] %v579_v36 }
 0x123   :  { %v1001_v37 = vpop.f32.mrb[6].mxu0  ;;  %v1049_v38 = vpop.f32.mrb[6].mxu1 }
 0x124   :  { %725 = vst [vmem:[#allocation2 + $0x38] sm:$0xff] %v1001_v37  ;;  %757 = vst [vmem:[#allocation2 + $0x138] sm:$0xff] %v1049_v38  ;;  %v429_v39 = vpop.f32.mrb[7].mxu0  ;;  %v589_v40 = vpop.f32.mrb[7].mxu1 }
 0x125   :  { %724 = vst [vmem:[#allocation2 + $0x30] sm:$0xff] %v429_v39  ;;  %756 = vst [vmem:[#allocation2 + $0x130] sm:$0xff] %v589_v40 }
 0x127   :  { %v1004_v41 = vpop.f32.mrb[8].mxu0  ;;  %v1052_v42 = vpop.f32.mrb[8].mxu1 }
 0x128   :  { %727 = vst [vmem:[#allocation2 + $0x48] sm:$0xff] %v1004_v41  ;;  %759 = vst [vmem:[#allocation2 + $0x148] sm:$0xff] %v1052_v42  ;;  %v439_v43 = vpop.f32.mrb[9].mxu0  ;;  %v599_v44 = vpop.f32.mrb[9].mxu1 }
 0x129   :  { %726 = vst [vmem:[#allocation2 + $0x40] sm:$0xff] %v439_v43  ;;  %758 = vst [vmem:[#allocation2 + $0x140] sm:$0xff] %v599_v44 }
 0x12b   :  { %v1007_v45 = vpop.f32.mrb[10].mxu0  ;;  %v1055_v46 = vpop.f32.mrb[10].mxu1 }
 0x12c   :  { %729 = vst [vmem:[#allocation2 + $0x58] sm:$0xff] %v1007_v45  ;;  %761 = vst [vmem:[#allocation2 + $0x158] sm:$0xff] %v1055_v46  ;;  %v449_v47 = vpop.f32.mrb[11].mxu0  ;;  %v609_v48 = vpop.f32.mrb[11].mxu1 }
 0x12d   :  { %728 = vst [vmem:[#allocation2 + $0x50] sm:$0xff] %v449_v47  ;;  %760 = vst [vmem:[#allocation2 + $0x150] sm:$0xff] %v609_v48 }
 0x12f   :  { %v1010_v49 = vpop.f32.mrb[12].mxu0  ;;  %v1058_v50 = vpop.f32.mrb[12].mxu1 }
 0x130   :  { %731 = vst [vmem:[#allocation2 + $0x68] sm:$0xff] %v1010_v49  ;;  %763 = vst [vmem:[#allocation2 + $0x168] sm:$0xff] %v1058_v50  ;;  %v459_v51 = vpop.f32.mrb[13].mxu0  ;;  %v619_v52 = vpop.f32.mrb[13].mxu1 }
 0x131   :  { %730 = vst [vmem:[#allocation2 + $0x60] sm:$0xff] %v459_v51  ;;  %762 = vst [vmem:[#allocation2 + $0x160] sm:$0xff] %v619_v52 }
 0x133   :  { %v1013_v53 = vpop.f32.mrb[14].mxu0  ;;  %v1061_v54 = vpop.f32.mrb[14].mxu1 }
 0x134   :  { %733 = vst [vmem:[#allocation2 + $0x78] sm:$0xff] %v1013_v53  ;;  %765 = vst [vmem:[#allocation2 + $0x178] sm:$0xff] %v1061_v54  ;;  %v469_v55 = vpop.f32.mrb[15].mxu0  ;;  %v629_v56 = vpop.f32.mrb[15].mxu1 }
 0x135   :  { %732 = vst [vmem:[#allocation2 + $0x70] sm:$0xff] %v469_v55  ;;  %764 = vst [vmem:[#allocation2 + $0x170] sm:$0xff] %v629_v56 }
 0x137   :  { %v1016_v57 = vpop.f32.mrb[16].mxu0  ;;  %v1064_v58 = vpop.f32.mrb[16].mxu1 }
 0x138   :  { %735 = vst [vmem:[#allocation2 + $0x88] sm:$0xff] %v1016_v57  ;;  %767 = vst [vmem:[#allocation2 + $0x188] sm:$0xff] %v1064_v58  ;;  %v479_v59 = vpop.f32.mrb[17].mxu0  ;;  %v639_v60 = vpop.f32.mrb[17].mxu1 }
 0x139   :  { %734 = vst [vmem:[#allocation2 + $0x80] sm:$0xff] %v479_v59  ;;  %766 = vst [vmem:[#allocation2 + $0x180] sm:$0xff] %v639_v60 }
 0x13b   :  { %v1019_v61 = vpop.f32.mrb[18].mxu0  ;;  %v1067_v62 = vpop.f32.mrb[18].mxu1 }
 0x13c   :  { %737 = vst [vmem:[#allocation2 + $0x98] sm:$0xff] %v1019_v61  ;;  %769 = vst [vmem:[#allocation2 + $0x198] sm:$0xff] %v1067_v62  ;;  %v489_v63 = vpop.f32.mrb[19].mxu0  ;;  %v649_v0 = vpop.f32.mrb[19].mxu1 }
 0x13d   :  { %736 = vst [vmem:[#allocation2 + $0x90] sm:$0xff] %v489_v63  ;;  %768 = vst [vmem:[#allocation2 + $0x190] sm:$0xff] %v649_v0 }
 0x13f   :  { %v1022_v1 = vpop.f32.mrb[20].mxu0  ;;  %v1070_v2 = vpop.f32.mrb[20].mxu1 }
 0x140   :  { %739 = vst [vmem:[#allocation2 + $0xa8] sm:$0xff] %v1022_v1  ;;  %771 = vst [vmem:[#allocation2 + $0x1a8] sm:$0xff] %v1070_v2  ;;  %v499_v3 = vpop.f32.mrb[21].mxu0  ;;  %v659_v4 = vpop.f32.mrb[21].mxu1 }
 0x141   :  { %738 = vst [vmem:[#allocation2 + $0xa0] sm:$0xff] %v499_v3  ;;  %770 = vst [vmem:[#allocation2 + $0x1a0] sm:$0xff] %v659_v4 }
 0x143   :  { %v1025_v5 = vpop.f32.mrb[22].mxu0  ;;  %v1073_v6 = vpop.f32.mrb[22].mxu1 }
 0x144   :  { %741 = vst [vmem:[#allocation2 + $0xb8] sm:$0xff] %v1025_v5  ;;  %773 = vst [vmem:[#allocation2 + $0x1b8] sm:$0xff] %v1073_v6  ;;  %v509_v7 = vpop.f32.mrb[23].mxu0  ;;  %v669_v8 = vpop.f32.mrb[23].mxu1 }
 0x145   :  { %740 = vst [vmem:[#allocation2 + $0xb0] sm:$0xff] %v509_v7  ;;  %772 = vst [vmem:[#allocation2 + $0x1b0] sm:$0xff] %v669_v8 }
 0x147   :  { %v1028_v9 = vpop.f32.mrb[24].mxu0  ;;  %v1076_v10 = vpop.f32.mrb[24].mxu1 }
 0x148   :  { %743 = vst [vmem:[#allocation2 + $0xc8] sm:$0xff] %v1028_v9  ;;  %775 = vst [vmem:[#allocation2 + $0x1c8] sm:$0xff] %v1076_v10  ;;  %v519_v11 = vpop.f32.mrb[25].mxu0  ;;  %v679_v12 = vpop.f32.mrb[25].mxu1 }
 0x149   :  { %742 = vst [vmem:[#allocation2 + $0xc0] sm:$0xff] %v519_v11  ;;  %774 = vst [vmem:[#allocation2 + $0x1c0] sm:$0xff] %v679_v12 }
 0x14b   :  { %v1031_v13 = vpop.f32.mrb[26].mxu0  ;;  %v1079_v14 = vpop.f32.mrb[26].mxu1 }
 0x14c   :  { %745 = vst [vmem:[#allocation2 + $0xd8] sm:$0xff] %v1031_v13  ;;  %777 = vst [vmem:[#allocation2 + $0x1d8] sm:$0xff] %v1079_v14  ;;  %v529_v15 = vpop.f32.mrb[27].mxu0  ;;  %v689_v16 = vpop.f32.mrb[27].mxu1 }
 0x14d   :  { %744 = vst [vmem:[#allocation2 + $0xd0] sm:$0xff] %v529_v15  ;;  %776 = vst [vmem:[#allocation2 + $0x1d0] sm:$0xff] %v689_v16 }
 0x14f   :  { %v1034_v17 = vpop.f32.mrb[28].mxu0  ;;  %v1082_v18 = vpop.f32.mrb[28].mxu1 }
 0x150   :  { %747 = vst [vmem:[#allocation2 + $0xe8] sm:$0xff] %v1034_v17  ;;  %779 = vst [vmem:[#allocation2 + $0x1e8] sm:$0xff] %v1082_v18  ;;  %v539_v19 = vpop.f32.mrb[29].mxu0  ;;  %v699_v20 = vpop.f32.mrb[29].mxu1 }
 0x151   :  { %746 = vst [vmem:[#allocation2 + $0xe0] sm:$0xff] %v539_v19  ;;  %778 = vst [vmem:[#allocation2 + $0x1e0] sm:$0xff] %v699_v20 }
 0x153   :  { %v1037_v21 = vpop.f32.mrb[30].mxu0  ;;  %v1085_v22 = vpop.f32.mrb[30].mxu1 }
 0x154   :  { %749 = vst [vmem:[#allocation2 + $0xf8] sm:$0xff] %v1037_v21  ;;  %781 = vst [vmem:[#allocation2 + $0x1f8] sm:$0xff] %v1085_v22  ;;  %v549_v23 = vpop.f32.mrb[31].mxu0  ;;  %v709_v24 = vpop.f32.mrb[31].mxu1 }
 0x155   :  { %748 = vst [vmem:[#allocation2 + $0xf0] sm:$0xff] %v549_v23  ;;  %780 = vst [vmem:[#allocation2 + $0x1f0] sm:$0xff] %v709_v24 }
 0x156   :  { %1164 = shalt.err (!%p1161_p4)
}
 0x157   :  { %s1165_s28 = scalar_lea.hbm %s1583_s2, 8192 }
 0x158   :  { %p1166_p5 = scmp.ne.s32.totalorder %s1583_s2, %s1165_s28  ;;  %p1169_p6 = scmp.lt.u32.totalorder %s1165_s28, %s1583_s2 }
 0x15a   :  { %p1171_p7 = pnand %p1169_p6, %p1166_p5 }
 0x15c   :  { %1174 = shalt.err (!%p1171_p7)
}
 0x15d   :  { %s1178_s5 = smov 128   ;;  %s1179_s6 = smov 8  }
 0x15e   :  { %793 = dma.vmem_to_hbm [thread:$0]  %s788_s24, 8192, %s1583_s2, [#allocation3], %s1178_s5, %s1178_s5, %s1179_s6  }
 0x15f   :  { %1175 = dma.done.wait [#allocation3], 8192  }
 0x160   :  { %1176 = vsyncadd [#allocation3], 4294959104 }
 0x161   :  { %797 = vsyncpa [#allocation3], 1 }

</bundles_post_ra>
